<compile_context>
chip_gen: v6e
topology: v6e:2x2x1
jax: 0.10.0
libtpu: 0.0.40
codegen_flags: <defaults>
</compile_context>

<pallas_src>
import functools

import jax
import jax.numpy as jnp
from jax.experimental import pallas as pl
from jax.experimental.pallas import tpu as pltpu


# --------------------------------------------------------------------------- #
# Kernels
# --------------------------------------------------------------------------- #
def _attention_aggregator_kernel(x_ref, w_ref, o_ref):
    """Whole-sequence path.  x_ref: (T, S, D), w_ref: (1, D), o_ref: (T, 1, D)."""
    x = x_ref[...]                                              # (T, S, D), native dtype
    t, s, d = x.shape
    w = jnp.broadcast_to(w_ref[...][None, :, :], (t, 1, d))     # (T, 1, D), native dtype

    # scores on the MXU: batched (1, D) . (S, D)^T -> (T, 1, S), f32 accumulate.
    scores = jnp.einsum("ted,tsd->tes", w, x,
                        preferred_element_type=jnp.float32)     # (T, 1, S)

    # Numerically stable softmax over the sequence (lane) axis, normalization deferred.
    m = jnp.max(scores, axis=-1, keepdims=True)                 # (T, 1, 1)
    e = jnp.exp(scores - m)                                     # (T, 1, S) f32
    l = jnp.sum(e, axis=-1, keepdims=True)                      # (T, 1, 1)

    # Weighted sum on the MXU: batched (1, S) @ (S, D), contraction over S.
    acc = jnp.einsum("tus,tsd->tud", e.astype(x.dtype), x,
                     preferred_element_type=jnp.float32)        # (T, 1, D)

    inv_l = pl.reciprocal(l, approx=False)                      # (T, 1, 1)
    o_ref[...] = (acc * inv_l).astype(o_ref.dtype)


def _attention_aggregator_stiled_kernel(x_ref, w_ref, o_ref,
                                         m_sc, l_sc, acc_sc, *, seq_len):
    """S-tiled online-softmax path.  x_ref: (T, TS, D); running m/l/acc scratch."""
    si = pl.program_id(1)
    x = x_ref[...]                                              # (T, TS, D)
    t, ts, d = x.shape

    @pl.when(si == 0)
    def _():
        m_sc[...] = jnp.full_like(m_sc, -jnp.inf)
        l_sc[...] = jnp.zeros_like(l_sc)
        acc_sc[...] = jnp.zeros_like(acc_sc)

    w = jnp.broadcast_to(w_ref[...][None, :, :], (t, 1, d))     # (T, 1, D)
    s = jnp.einsum("ted,tsd->tes", w, x,
                   preferred_element_type=jnp.float32)          # (T, 1, TS)

    # Mask the padded tail of the sequence axis (last S block may overrun seq_len).
    pos = si * ts + jax.lax.broadcasted_iota(jnp.int32, s.shape, 2)
    s = jnp.where(pos < seq_len, s, -jnp.inf)

    m_prev = m_sc[...]                                          # (T, 1, 1)
    m_new = jnp.maximum(m_prev, jnp.max(s, axis=-1, keepdims=True))
    alpha = jnp.exp(m_prev - m_new)                             # (T, 1, 1)
    p = jnp.exp(s - m_new)                                      # (T, 1, TS)

    l_sc[...] = alpha * l_sc[...] + jnp.sum(p, axis=-1, keepdims=True)
    acc_sc[...] = alpha * acc_sc[...] + jnp.einsum(
        "tus,tsd->tud", p.astype(x.dtype), x,
        preferred_element_type=jnp.float32)                     # (T, 1, D)
    m_sc[...] = m_new

    @pl.when(si == pl.num_programs(1) - 1)
    def _():
        inv_l = pl.reciprocal(l_sc[...], approx=False)
        o_ref[...] = (acc_sc[...] * inv_l).astype(o_ref.dtype)


# --------------------------------------------------------------------------- #
# Wrapper
# --------------------------------------------------------------------------- #
def _tpu_budget():
    """Generation-aware VMEM limit / target block size / core-count heuristic."""
    vmem_cap = 128 * 1024 * 1024
    try:
        info = pltpu.get_tpu_info()
        vmem_cap = int(getattr(info, "vmem_capacity_bytes", vmem_cap))
    except Exception:
        pass
    # v7x has 64 MiB VMEM per TensorCore (and 2 TCs); v5e/v6e have 128 MiB (1 TC).
    num_cores = 2 if vmem_cap <= 64 * 1024 * 1024 else 1
    # Leave headroom for compiler-internal scratch / semaphores (critical on v7x).
    vmem_limit = max(16 << 20, min(64 << 20, vmem_cap - (12 << 20)))
    # Double-buffered x blocks + intermediates must fit under vmem_limit.
    target_block = min(16 << 20, vmem_limit // 4)
    return vmem_limit, target_block, num_cores


def attention_aggregator(x, weight, bias=None, *, batch_block=None, s_block=None):
    """AttentionAggregator.forward.  x: (B, S, D); weight: (1, D) from nn.Linear(D, 1).
    The bias is ignored: softmax(scores + c) == softmax(scores), so it cannot change
    the output.  Returns (B, 1, D)."""
    del bias
    B, S, D = x.shape
    # Keep the weight in x's dtype so the MXU contraction never promotes the x block.
    w = jnp.asarray(weight).reshape(1, D).astype(x.dtype)

    vmem_limit, target_block, num_cores = _tpu_budget()
    itemsize = jnp.dtype(x.dtype).itemsize
    per_batch = S * D * itemsize

    use_s_tiling = (s_block is not None) or (per_batch > target_block)

    if not use_s_tiling:
        # ------------------------- whole-sequence path ------------------------- #
        if batch_block is None:
            bt = max(1, min(B, target_block // max(1, per_batch)))
            if num_cores > 1 and B >= num_cores:
                bt = min(bt, pl.cdiv(B, num_cores))   # engage both v7x TensorCores
        else:
            bt = min(batch_block, B)
        grid = (pl.cdiv(B, bt),)
        return pl.pallas_call(
            _attention_aggregator_kernel,
            out_shape=jax.ShapeDtypeStruct((B, 1, D), x.dtype),
            grid_spec=pltpu.PrefetchScalarGridSpec(
                num_scalar_prefetch=0,
                grid=grid,
                in_specs=[
                    pl.BlockSpec((bt, S, D), lambda i: (i, 0, 0)),
                    pl.BlockSpec((1, D), lambda i: (0, 0)),
                ],
                out_specs=pl.BlockSpec((bt, 1, D), lambda i: (i, 0, 0)),
            ),
            compiler_params=pltpu.CompilerParams(
                dimension_semantics=("parallel",),
                vmem_limit_bytes=vmem_limit,
            ),
        )(x, w)

    # --------------------- S-tiled online-softmax path ------------------------ #
    if s_block is None:
        ts = max(8, (target_block // max(1, D * itemsize)) // 8 * 8)
    else:
        ts = max(8, (s_block // 8) * 8)
    ts = min(ts, pl.cdiv(S, 8) * 8)

    if batch_block is None:
        bt = max(1, min(B, target_block // max(1, ts * D * itemsize)))
        if num_cores > 1 and B >= num_cores:
            bt = min(bt, pl.cdiv(B, num_cores))
    else:
        bt = min(batch_block, B)

    grid = (pl.cdiv(B, bt), pl.cdiv(S, ts))
    kernel = functools.partial(_attention_aggregator_stiled_kernel, seq_len=S)
    return pl.pallas_call(
        kernel,
        out_shape=jax.ShapeDtypeStruct((B, 1, D), x.dtype),
        grid_spec=pltpu.PrefetchScalarGridSpec(
            num_scalar_prefetch=0,
            grid=grid,
            in_specs=[
                pl.BlockSpec((bt, ts, D), lambda i, j: (i, j, 0)),
                pl.BlockSpec((1, D), lambda i, j: (0, 0)),
            ],
            out_specs=pl.BlockSpec((bt, 1, D), lambda i, j: (i, 0, 0)),
            scratch_shapes=[
                pltpu.VMEM((bt, 1, 1), jnp.float32),   # running max m
                pltpu.VMEM((bt, 1, 1), jnp.float32),   # running denom l
                pltpu.VMEM((bt, 1, D), jnp.float32),   # running weighted sum
            ],
        ),
        compiler_params=pltpu.CompilerParams(
            dimension_semantics=("parallel", "arbitrary"),
            vmem_limit_bytes=vmem_limit,
        ),
    )(x, w)


def attention_aggregator_ref(x, weight, bias):
    """Pure-JAX reference mirroring the PyTorch forward (bias included)."""
    scores = jnp.einsum("bsd,d->bs", x, weight[0]) + bias[0]        # (B, S)
    attn = jax.nn.softmax(scores, axis=1)                           # (B, S)
    return jnp.einsum("bs,bsd->bd", attn, x)[:, None, :]            # (B, 1, D)


# --------------------------------------------------------------------------- #
# Smoke tests
# --------------------------------------------------------------------------- #
if __name__ == "__main__":
    key = jax.random.PRNGKey(0)
    kx, kw, kb, kx2, kw2 = jax.random.split(key, 5)

    # Test 1: small module-consistent shapes -> whole-sequence path.
    B, S, D = 2, 8, 32
    x = jax.random.normal(kx, (B, S, D), dtype=jnp.float32)
    weight = jax.random.normal(kw, (1, D), dtype=jnp.float32) * 0.1
    bias = jax.random.normal(kb, (1,), dtype=jnp.float32) * 0.1

    out = jax.block_until_ready(attention_aggregator(x, weight, bias))
    ref = attention_aggregator_ref(x, weight, bias)
    assert out.shape == (B, 1, D), out.shape
    assert jnp.allclose(out, ref, atol=1e-5, rtol=1e-5), "whole-sequence path mismatch"

    # Test 2: forced S-tiled online-softmax path, lane-width D, non-divisible batch.
    B2, S2, D2 = 3, 64, 128
    x2 = jax.random.normal(kx2, (B2, S2, D2), dtype=jnp.float32)
    w2 = jax.random.normal(kw2, (1, D2), dtype=jnp.float32) * 0.1
    b2 = jax.random.normal(kb, (1,), dtype=jnp.float32) * 0.1

    out2 = jax.block_until_ready(
        attention_aggregator(x2, w2, b2, batch_block=2, s_block=16))
    ref2 = attention_aggregator_ref(x2, w2, b2)
    assert out2.shape == (B2, 1, D2), out2.shape
    assert jnp.allclose(out2, ref2, atol=1e-4, rtol=1e-4), "S-tiled path mismatch"

    print("KERNEL_OK")
</pallas_src>

<mosaic_0001>
module attributes {stable_mosaic.version = 11 : i64} {
  func.func @_attention_aggregator_kernel(%arg0: i32, %arg1: memref<2x8x32xf32, #tpu.memory_space<vmem>>, %arg2: memref<1x32xf32, #tpu.memory_space<vmem>>, %arg3: memref<2x1x32xf32, #tpu.memory_space<vmem>>) attributes {dimension_semantics = [#tpu.dimension_semantics<parallel>], iteration_bounds = array<i64: 1>, scalar_prefetch = 0 : i64, scratch_operands = 0 : i64, tpu.core_type = #tpu.core_type<tc>, window_params = [{transform_indices = @transform_0, window_bounds = array<i64: 2, 8, 32>}, {pipeline_mode = #tpu.pipeline_mode<synchronous>, transform_indices = @transform_1, window_bounds = array<i64: 1, 32>}, {transform_indices = @transform_2, window_bounds = array<i64: 2, 1, 32>}]} {
    %c0 = arith.constant 0 : index
    %c0_0 = arith.constant 0 : index
    %c0_1 = arith.constant 0 : index
    %0 = vector.load %arg1[%c0, %c0_0, %c0_1] : memref<2x8x32xf32, #tpu.memory_space<vmem>>, vector<2x8x32xf32>
    %c0_2 = arith.constant 0 : index
    %c0_3 = arith.constant 0 : index
    %1 = vector.load %arg2[%c0_2, %c0_3] : memref<1x32xf32, #tpu.memory_space<vmem>>, vector<1x32xf32>
    %2 = vector.shape_cast %1 : vector<1x32xf32> to vector<1x1x32xf32>
    %3 = vector.shape_cast %2 : vector<1x1x32xf32> to vector<1x1x32xf32>
    %4 = vector.broadcast %3 : vector<1x1x32xf32> to vector<2x1x32xf32>
    "tpu.trace_start"() <{level = 10 : i32, message = "ted,tsd->tes"}> : () -> ()
    %cst = arith.constant dense<0.000000e+00> : vector<2x1x8xf32>
    %5 = tpu.matmul %4, %0, %cst {dimension_numbers = #tpu.dot_dimension_numbers<[2], [2], [1], [1], [0, 0, 0, 1, 1, 1], [0], [0]>} : vector<2x1x32xf32>, vector<2x8x32xf32>, vector<2x1x8xf32> -> vector<2x1x8xf32>
    "tpu.trace_stop"() : () -> ()
    %cst_4 = arith.constant dense<0xFF800000> : vector<2x1xf32>
    %6 = vector.multi_reduction <maximumf>, %5, %cst_4 [2] : vector<2x1x8xf32> to vector<2x1xf32>
    %7 = vector.shape_cast %6 : vector<2x1xf32> to vector<2x1x1xf32>
    %8 = vector.broadcast %7 : vector<2x1x1xf32> to vector<2x1x8xf32>
    %9 = arith.subf %5, %8 : vector<2x1x8xf32>
    %10 = math.exp %9 : vector<2x1x8xf32>
    %cst_5 = arith.constant dense<0.000000e+00> : vector<2x1xf32>
    %11 = vector.multi_reduction <add>, %10, %cst_5 [2] : vector<2x1x8xf32> to vector<2x1xf32>
    %12 = vector.shape_cast %11 : vector<2x1xf32> to vector<2x1x1xf32>
    "tpu.trace_start"() <{level = 10 : i32, message = "tus,tsd->tud"}> : () -> ()
    %cst_6 = arith.constant dense<0.000000e+00> : vector<2x1x32xf32>
    %13 = tpu.matmul %10, %0, %cst_6 {dimension_numbers = #tpu.dot_dimension_numbers<[2], [1], [1], [2], [0, 0, 0, 1, 1, 2], [0], [0]>} : vector<2x1x8xf32>, vector<2x8x32xf32>, vector<2x1x32xf32> -> vector<2x1x32xf32>
    "tpu.trace_stop"() : () -> ()
    %14 = tpu.reciprocal %12 : vector<2x1x1xf32> -> vector<2x1x1xf32>
    %15 = vector.broadcast %14 : vector<2x1x1xf32> to vector<2x1x32xf32>
    %16 = arith.mulf %13, %15 : vector<2x1x32xf32>
    %c0_7 = arith.constant 0 : index
    %c0_8 = arith.constant 0 : index
    %c0_9 = arith.constant 0 : index
    %17 = vector.load %arg3[%c0_7, %c0_8, %c0_9] : memref<2x1x32xf32, #tpu.memory_space<vmem>>, vector<2x1x32xf32>
    tpu.vector_store %arg3[%c0_7, %c0_8, %c0_9], %16 {strides = array<i32>} : memref<2x1x32xf32, #tpu.memory_space<vmem>>, vector<2x1x32xf32>,
    return
  }
  func.func @transform_0(%arg0: i32) -> (i32, i32, i32) {
    %c0_i32 = arith.constant 0 : i32
    %c0_i32_0 = arith.constant 0 : i32
    %c0_i32_1 = arith.constant 0 : i32
    return %arg0, %c0_i32, %c0_i32_0 : i32, i32, i32
  }
  func.func @transform_1(%arg0: i32) -> (i32, i32) {
    %c0_i32 = arith.constant 0 : i32
    %c0_i32_0 = arith.constant 0 : i32
    %c0_i32_1 = arith.constant 0 : i32
    return %c0_i32, %c0_i32_0 : i32, i32
  }
  func.func @transform_2(%arg0: i32) -> (i32, i32, i32) {
    %c0_i32 = arith.constant 0 : i32
    %c0_i32_0 = arith.constant 0 : i32
    %c0_i32_1 = arith.constant 0 : i32
    return %arg0, %c0_i32, %c0_i32_0 : i32, i32, i32
  }
}

</mosaic_0001>

<bundles_post_ra>
// kernel: tpu_custom_call.1
= control target key start
LH: loop header
LB: loop body
LE: loop exit
PB: predicated region body
PF: predicated region fallthrough
CT: control target
= control target key end

     0   :  { %7 = vsyncpa [#allocation3], 0  ;;  %s503_s0 = inlined_call_operand.hbm [shape: f32[2,8,32], index: 0, kind: input, shape index: {}]   ;;  %s504_s1 = inlined_call_operand.vmem [shape: f32[1,32], index: 1, kind: input, shape index: {}]   ;;  %s505_s2 = inlined_call_operand.hbm [shape: f32[2,1,32], index: 2, kind: output, shape index: {}]  }
   0x1   :  { %8 = vsyncpa [#allocation4], 0  ;;  %s463_s9 = smov [#allocation2]  }
   0x2   :  { %s14_s10 = sshll.u32 %s463_s9, 4  ;;  %s15_s10 = int_to_ptr.vmem [resolvable:$true] %s14_s10 }
   0x3   :  { %s427_s11 = scalar_lea.vmem %s15_s10, 256  ;;  %p432_p1 = scmp.lt.s32.totalorder %s15_s10, %s15_s10 }
   0x4   :  { %p428_p0 = scmp.ne.s32.totalorder %s15_s10, %s427_s11  ;;  %p433_p2 = scmp.lt.s32.totalorder %s427_s11, %s427_s11 }
   0x6   :  { %p434_p3 = por %p433_p2, %p432_p1 }
   0x8   :  { %p435_p4 = pnand %p434_p3, %p428_p0 }
   0xa   :  { %438 = shalt.err (!%p435_p4)
}
   0xb   :  { %s464_s12 = smov 128   ;;  %s465_s13 = smov 8  }
   0xc   :  { %20 = dma.hbm_to_vmem [thread:$0]  %s503_s0, 256, %s15_s10, [#allocation3], %s464_s12, %s464_s12, %s465_s13  }
   0xd   :  { %459 = dma.done.wait [#allocation3], 256  }
   0xe   :  { %460 = vsyncadd [#allocation3], 4294967040  ;;  %v466_v0 = vmov 0.0   ;;  %vm467_vm0 = vmmov 0   ;;  %vm29_vm1 = vcmask 261120   ;;  %v26_v1 = vld [vmem:[#allocation2] sm:$0xff] }
   0xf   :  { %383 = vmatprep.subr.mxu0 %v466_v0  ;;  %388 = vmatprep.subr.mxu1 %v466_v0  ;;  %v27_v2 = vld [vmem:[#allocation2 + $0x8] sm:$0xff]  ;;  %v28_v3 = vld [vmem:[%s504_s1] sm:$0x1]  ;;  %vm179_vm2 = vcmask 57344   ;;  %vm198_vm3 = vcmask 64512   ;;  %vm349_vm4 = vcmask 253952  }
  0x10   :  { %385 = vmatprep.mubr.msk.f32.mxu0 %vm467_vm0, %v466_v0  ;;  %390 = vmatprep.mubr.msk.f32.mxu1 %vm467_vm0, %v466_v0  ;;  %s468_s0 = smov [#allocation5]  }
  0x11   :  { %384 = vmatpush3.xpose.msk.msra.mxu0 %vm29_vm1, %v26_v1  ;;  %389 = vmatpush3.xpose.msk.msra.mxu1 %vm29_vm1, %v27_v2  ;;  %s357_s1 = sshll.u32 %s468_s0, 4  ;;  %s358_s1 = int_to_ptr.vmem [resolvable:$true] %s357_s1 }
  0x12   :  { %393 = vmatprep.subr.mxu0 %v466_v0  ;;  %398 = vmatprep.subr.mxu1 %v466_v0  ;;  %s439_s18 = scalar_lea.vmem %s358_s1, 32  ;;  %p444_p6 = scmp.lt.s32.totalorder %s358_s1, %s358_s1 }
  0x13   :  { %p440_p5 = scmp.ne.s32.totalorder %s358_s1, %s439_s18  ;;  %p445_p7 = scmp.lt.s32.totalorder %s439_s18, %s439_s18 }
  0x14   :  { %386 = vmatmul.mubr.msk.f32.vlgmr.msra.gmra.mxu0 %vm29_vm1, %v28_v3  ;;  %391 = vmatmul.mubr.msk.f32.vlgmr.msra.gmra.mxu1 %vm29_vm1, %v28_v3 }
  0x15   :  { %394 = vmatpush3.msra.mxu0 %v26_v1  ;;  %395 = vmatprep.mubr.msk.f32.mxu0 %vm467_vm0, %v466_v0  ;;  %p446_p8 = por %p445_p7, %p444_p6 }
  0x16   :  { %399 = vmatpush3.msra.mxu1 %v27_v2  ;;  %400 = vmatprep.mubr.msk.f32.mxu1 %vm467_vm0, %v466_v0 }
  0x17   :  { %p447_p9 = pnand %p446_p8, %p440_p5 }
  0xd4   :  { %v102_v4 = vpop.f32.mrf.mxu0  ;;  %v175_v5 = vpop.f32.mrf.mxu1 }
  0xd5   :  { %v180_v6 = vsel %vm179_vm2, %v102_v4, -inf  ;;  %v183_v9 = vsel %vm179_vm2, %v175_v5, -inf }
  0xd6   :  { %181 = vmax.xlane.f32.xlu0 %v180_v6  ;;  %v387_v7 = vpop.f32.mrf.mxu0  ;;  %v392_v8 = vpop.f32.mrf.mxu1 }
  0xda   :  { %184 = vmax.xlane.f32.xlu0 %v183_v9 }
 0x15f   :  { %v182_v10 = vpop.xlane.xlu0 %181 }
 0x160   :  { %v186_v11 = vsub.f32 %v102_v4, %v182_v10 }
 0x162   :  { %v188_v12 = vmul.f32 1.442695, %v186_v11 }
 0x163   :  { %v185_v13 = vpop.xlane.xlu0 %184 }
 0x164   :  { %411 = vpow2.f32 %v188_v12  ;;  %v187_v14 = vsub.f32 %v175_v5, %v185_v13 }
 0x166   :  { %v190_v15 = vmul.f32 1.442695, %v187_v14 }
 0x168   :  { %413 = vpow2.f32 %v190_v15 }
 0x171   :  { %v412_v16 = vpop.eup %411 }
 0x172   :  { %396 = vmatmul.mubr.msk.f32.vlgmr.msra.gmra.mxu0 %vm198_vm3, %v412_v16  ;;  %v192_v17 = vsel %vm179_vm2, %v412_v16, 0.0 }
 0x173   :  { %193 = vadd.xlane.f32.xlu1 %v192_v17 }
 0x175   :  { %v414_v18 = vpop.eup %413 }
 0x176   :  { %401 = vmatmul.mubr.msk.f32.vlgmr.msra.gmra.mxu1 %vm198_vm3, %v414_v18  ;;  %v195_v19 = vsel %vm179_vm2, %v414_v18, 0.0 }
 0x177   :  { %196 = vadd.xlane.f32.xlu1 %v195_v19 }
 0x1fc   :  { %v194_v20 = vpop.xlane.xlu1 %193 }
 0x1fd   :  { %415 = vrcp.f32 %v194_v20 }
 0x200   :  { %v197_v21 = vpop.xlane.xlu1 %196 }
 0x201   :  { %417 = vrcp.f32 %v197_v21 }
 0x20a   :  { %v416_v22 = vpop.eup %415 }
 0x20e   :  { %v418_v26 = vpop.eup %417 }
 0x232   :  { %v268_v23 = vpop.f32.mrf.mxu0 }
 0x233   :  { %v347_v24 = vmul.f32 %v416_v22, %v268_v23 }
 0x234   :  { %v397_v25 = vpop.f32.mrf.mxu0 }
 0x235   :  { %350 = vst.msk [vmem:[#allocation5] sm:$0x1] %vm349_vm4, %v347_v24 }
 0x236   :  { %v341_v27 = vpop.f32.mrf.mxu1 }
 0x237   :  { %v348_v28 = vmul.f32 %v418_v26, %v341_v27 }
 0x238   :  { %v402_v29 = vpop.f32.mrf.mxu1 }
 0x239   :  { %351 = vst.msk [vmem:[#allocation5 + $0x1] sm:$0x1] %vm349_vm4, %v348_v28 }
 0x23a   :  { %450 = shalt.err (!%p447_p9)
}
 0x23b   :  { %s469_s19 = smov 16   ;;  %s470_s20 = smov 1  }
 0x23c   :  { %363 = dma.vmem_to_hbm [thread:$0]  %s358_s1, 32, %s505_s2, [#allocation4], %s469_s19, %s469_s19, %s470_s20  }
 0x23d   :  { %461 = dma.done.wait [#allocation4], 32  }
 0x23e   :  { %462 = vsyncadd [#allocation4], 4294967264 }
 0x23f   :  { %367 = vsyncpa [#allocation3], 1 }
 0x240   :  { %368 = vsyncpa [#allocation4], 1 }

</bundles_post_ra>
